<compile_context>
chip_gen: v6e
topology: v6e:2x2x1
jax: 0.10.0
libtpu: 0.0.40
codegen_flags: <defaults>
</compile_context>

<pallas_src>
import functools

import jax
import jax.numpy as jnp
from jax.experimental import pallas as pl
from jax.experimental.pallas import tpu as pltpu

IN_DIM = 784
HID_DIM = 256
OUT_DIM = 10
OUT_PAD = 128          # lane-dense padded fc2 output width
BN_EPS = 1e-5


def _bn_scale_shift(sum_h, sumsq_h, gamma, beta, n_rows):
    """Fold training-mode BatchNorm into a per-feature scale/shift."""
    inv_n = 1.0 / n_rows
    mean = sum_h * inv_n
    var = jnp.maximum(sumsq_h * inv_n - mean * mean, 0.0)
    scale = gamma * jax.lax.rsqrt(var + BN_EPS)
    shift = beta - mean * scale
    return scale, shift


# ----------------------------------------------------------------------------
# Small-batch kernel: single fused VMEM-resident block (grid=()).
# ----------------------------------------------------------------------------
def mlp_bn_fused_kernel(x_ref, w1_ref, pv_ref, w2_ref, o_ref):
    # fc1: bf16 MXU operands, f32 accumulation.  fc1 bias intentionally
    # omitted (cancels exactly inside training-mode BatchNorm).
    h = jnp.dot(x_ref[...], w1_ref[...],
                preferred_element_type=jnp.float32)            # [B, 256] f32

    # bn1: one fused stats pass (sum + sum-of-squares), folded to scale/shift.
    scale, shift = _bn_scale_shift(
        jnp.sum(h, axis=0, keepdims=True),
        jnp.sum(h * h, axis=0, keepdims=True),
        pv_ref[0:1, :], pv_ref[1:2, :], h.shape[0])

    # bn1 apply + relu1 in a single multiply-add + max pass.
    hn = jnp.maximum(h * scale + shift, 0.0)

    # fc2: lane-dense 128-wide padded output -> unmasked full-lane stores.
    o = jnp.dot(hn.astype(jnp.bfloat16), w2_ref[...],
                preferred_element_type=jnp.float32)            # [B, 128]
    o_ref[...] = o + pv_ref[2:3, :OUT_PAD]


# ----------------------------------------------------------------------------
# Large-batch kernel: batch-tiled grid=(2, B//TM), resident weights,
# two-pass BatchNorm (pass 0 = stats, pass 1 = normalize + fc2).
# ----------------------------------------------------------------------------
def mlp_bn_tiled_kernel(x_ref, w1_ref, pv_ref, w2_ref, o_ref,
                        sum_ref, sumsq_ref, scale_ref, shift_ref, *, n_rows):
    p = pl.program_id(0)   # 0: accumulate BN stats, 1: normalize + fc2
    i = pl.program_id(1)   # batch tile

    @pl.when(jnp.logical_and(p == 0, i == 0))
    def _():
        sum_ref[...] = jnp.zeros_like(sum_ref)
        sumsq_ref[...] = jnp.zeros_like(sumsq_ref)

    # fc1 for this tile.  Recomputed in pass 1: re-reading bf16 x costs fewer
    # HBM bytes than writing + re-reading f32 h, and w1 is VMEM-resident
    # (constant index_map) so there is no extra weight traffic.
    h = jnp.dot(x_ref[...], w1_ref[...],
                preferred_element_type=jnp.float32)            # [TM, 256] f32

    @pl.when(p == 0)
    def _():
        sum_ref[...] += jnp.sum(h, axis=0, keepdims=True)
        sumsq_ref[...] += jnp.sum(h * h, axis=0, keepdims=True)

    @pl.when(jnp.logical_and(p == 1, i == 0))
    def _():
        scale, shift = _bn_scale_shift(sum_ref[...], sumsq_ref[...],
                                       pv_ref[0:1, :], pv_ref[1:2, :], n_rows)
        scale_ref[...] = scale
        shift_ref[...] = shift

    @pl.when(p == 1)
    def _():
        hn = jnp.maximum(h * scale_ref[...] + shift_ref[...], 0.0)
        o = jnp.dot(hn.astype(jnp.bfloat16), w2_ref[...],
                    preferred_element_type=jnp.float32)        # [TM, 128]
        o_ref[...] = o + pv_ref[2:3, :OUT_PAD]


# ----------------------------------------------------------------------------
# Wrappers
# ----------------------------------------------------------------------------
def prepare_params(w1, b1, gamma, beta, w2, b2):
    """One-time (model-setup) parameter preparation.  Do NOT call per step.

    Returns (w1_bf, pv, w2_p):
      w1_bf : [784, 256] bf16   fc1 weight, [in, out]
      pv    : [3, 256]  f32     row 0 = gamma, row 1 = beta,
                                row 2[:128] = fc2 bias zero-padded
      w2_p  : [256, 128] bf16   fc2 weight zero-padded to 128 lane-dense cols

    The fc1 bias b1 is dropped: a per-feature constant added before
    training-mode BatchNorm cancels exactly (mean shifts by the same amount,
    variance unchanged), so it cannot affect the output.
    """
    del b1
    w1_bf = jnp.asarray(w1, jnp.bfloat16)
    w2_p = jnp.zeros((HID_DIM, OUT_PAD), jnp.bfloat16)
    w2_p = w2_p.at[:, :OUT_DIM].set(jnp.asarray(w2, jnp.bfloat16))
    pv = jnp.zeros((3, HID_DIM), jnp.float32)
    pv = pv.at[0, :].set(jnp.asarray(gamma, jnp.float32).reshape(-1))
    pv = pv.at[1, :].set(jnp.asarray(beta, jnp.float32).reshape(-1))
    pv = pv.at[2, :OUT_DIM].set(jnp.asarray(b2, jnp.float32).reshape(-1))
    return w1_bf, pv, w2_p


def _forward_fused(x, w1_bf, pv, w2_p):
    B = x.shape[0]
    x_bf = x.astype(jnp.bfloat16)          # activations only; tiny per call

    full = lambda shape: pl.BlockSpec(shape, lambda: tuple(0 for _ in shape))
    cost = pl.CostEstimate(
        flops=2 * B * (IN_DIM * HID_DIM + HID_DIM * OUT_PAD),
        transcendentals=HID_DIM,
        bytes_accessed=(x_bf.size * 2 + w1_bf.size * 2 + pv.size * 4 +
                        w2_p.size * 2 + B * OUT_PAD * 4))

    out = pl.pallas_call(
        mlp_bn_fused_kernel,
        out_shape=jax.ShapeDtypeStruct((B, OUT_PAD), jnp.float32),
        grid=(),
        in_specs=[
            full((B, IN_DIM)),
            full((IN_DIM, HID_DIM)),
            full((3, HID_DIM)),
            full((HID_DIM, OUT_PAD)),
        ],
        out_specs=full((B, OUT_PAD)),
        compiler_params=pltpu.CompilerParams(vmem_limit_bytes=8 << 20),
        cost_estimate=cost,
    )(x_bf, w1_bf, pv, w2_p)
    return out[:, :OUT_DIM]


def _forward_tiled(x, w1_bf, pv, w2_p, block_b):
    B = x.shape[0]
    assert B % block_b == 0, "batch must be a multiple of the batch tile"
    nt = B // block_b
    x_bf = x.astype(jnp.bfloat16)

    kernel = functools.partial(mlp_bn_tiled_kernel, n_rows=float(B))
    cost = pl.CostEstimate(
        flops=2 * B * (2 * IN_DIM * HID_DIM + HID_DIM * OUT_PAD),
        transcendentals=HID_DIM,
        bytes_accessed=(2 * x_bf.size * 2 + w1_bf.size * 2 + pv.size * 4 +
                        w2_p.size * 2 + 2 * B * OUT_PAD * 4))

    out = pl.pallas_call(
        kernel,
        out_shape=jax.ShapeDtypeStruct((B, OUT_PAD), jnp.float32),
        grid_spec=pltpu.PrefetchScalarGridSpec(
            num_scalar_prefetch=0,
            grid=(2, nt),
            in_specs=[
                pl.BlockSpec((block_b, IN_DIM), lambda p, i: (i, 0)),
                pl.BlockSpec((IN_DIM, HID_DIM), lambda p, i: (0, 0)),   # resident
                pl.BlockSpec((3, HID_DIM), lambda p, i: (0, 0)),        # resident
                pl.BlockSpec((HID_DIM, OUT_PAD), lambda p, i: (0, 0)),  # resident
            ],
            out_specs=pl.BlockSpec((block_b, OUT_PAD), lambda p, i: (i, 0)),
            scratch_shapes=[pltpu.VMEM((1, HID_DIM), jnp.float32)] * 4,
        ),
        compiler_params=pltpu.CompilerParams(
            # Pass axis is inherently sequential; the batch axis carries the
            # shared BN-stats accumulator, so it is 'arbitrary' as well.
            dimension_semantics=("arbitrary", "arbitrary"),
            vmem_limit_bytes=32 << 20),
        cost_estimate=cost,
    )(x_bf, w1_bf, pv, w2_p)
    return out[:, :OUT_DIM]


def torch_model_forward(x, w1_bf, pv, w2_p, *, block_b=512):
    """TorchModel forward.  Small batches run as one fused VMEM block; large
    batches (multiple of block_b rows) run batch-tiled with resident weights
    and a two-pass BatchNorm."""
    B = x.shape[0]
    if B > block_b and B % block_b == 0:
        return _forward_tiled(x, w1_bf, pv, w2_p, block_b)
    return _forward_fused(x, w1_bf, pv, w2_p)


# ----------------------------------------------------------------------------
# References
# ----------------------------------------------------------------------------
def reference_forward_f32(x, w1, b1, gamma, beta, w2, b2):
    h = x @ w1 + b1
    mean = jnp.mean(h, axis=0, keepdims=True)
    var = jnp.mean((h - mean) ** 2, axis=0, keepdims=True)
    hn = (h - mean) / jnp.sqrt(var + BN_EPS) * gamma + beta
    hn = jnp.maximum(hn, 0.0)
    return hn @ w2 + b2


def reference_forward_bf16(x, w1, b1, gamma, beta, w2, b2):
    # Mirrors the kernel's mixed precision (bf16 MXU inputs, f32 accumulation,
    # f32 BN/elementwise) so the comparison isolates kernel correctness.
    # Note it keeps the fc1 bias, validating the bias-cancellation argument.
    h = jnp.dot(x.astype(jnp.bfloat16), w1.astype(jnp.bfloat16),
                preferred_element_type=jnp.float32) + b1
    mean = jnp.mean(h, axis=0, keepdims=True)
    var = jnp.mean((h - mean) ** 2, axis=0, keepdims=True)
    hn = (h - mean) / jnp.sqrt(var + BN_EPS) * gamma + beta
    hn = jnp.maximum(hn, 0.0)
    return jnp.dot(hn.astype(jnp.bfloat16), w2.astype(jnp.bfloat16),
                   preferred_element_type=jnp.float32) + b2


if __name__ == "__main__":
    key = jax.random.PRNGKey(0)
    k_x, k_w1, k_b1, k_w2, k_b2, k_g, k_be, k_x2 = jax.random.split(key, 8)

    # Deterministic parameter init (PyTorch-style uniform bounds).  gamma/beta
    # are perturbed away from the (1, 0) default so the BN scale/shift path is
    # actually exercised.
    bound1 = 1.0 / (IN_DIM ** 0.5)
    bound2 = 1.0 / (HID_DIM ** 0.5)
    w1 = jax.random.uniform(k_w1, (IN_DIM, HID_DIM), jnp.float32, -bound1, bound1)
    b1 = jax.random.uniform(k_b1, (1, HID_DIM), jnp.float32, -bound1, bound1)
    gamma = 1.0 + 0.1 * jax.random.uniform(k_g, (1, HID_DIM), jnp.float32, -1., 1.)
    beta = 0.1 * jax.random.uniform(k_be, (1, HID_DIM), jnp.float32, -1., 1.)
    w2 = jax.random.uniform(k_w2, (HID_DIM, OUT_DIM), jnp.float32, -bound2, bound2)
    b2 = jax.random.uniform(k_b2, (1, OUT_DIM), jnp.float32, -bound2, bound2)

    params = prepare_params(w1, b1, gamma, beta, w2, b2)   # once, at setup

    # --- small batch: single fused block ---
    B = 8
    x = jax.random.normal(k_x, (B, IN_DIM), jnp.float32)
    out = jax.block_until_ready(torch_model_forward(x, *params))
    assert out.shape == (B, OUT_DIM)
    ref_bf = reference_forward_bf16(x, w1, b1, gamma, beta, w2, b2)
    assert jnp.allclose(out, ref_bf, atol=5e-3, rtol=5e-3), (
        float(jnp.max(jnp.abs(out - ref_bf))))
    ref_f32 = reference_forward_f32(x, w1, b1, gamma, beta, w2, b2)
    assert jnp.allclose(out, ref_f32, atol=1e-1, rtol=1e-1), (
        float(jnp.max(jnp.abs(out - ref_f32))))

    # --- batch-tiled large-B path (tiny TM here just to exercise the grid;
    # production TM should be a multiple of 256 on v6e/v7x, 128 on v5e) ---
    B2, TM = 64, 32
    x2 = jax.random.normal(k_x2, (B2, IN_DIM), jnp.float32)
    out2 = jax.block_until_ready(_forward_tiled(x2, *params, TM))
    assert out2.shape == (B2, OUT_DIM)
    ref2 = reference_forward_bf16(x2, w1, b1, gamma, beta, w2, b2)
    assert jnp.allclose(out2, ref2, atol=5e-3, rtol=5e-3), (
        float(jnp.max(jnp.abs(out2 - ref2))))

    print("KERNEL_OK")
</pallas_src>

<mosaic_0001>
module attributes {stable_mosaic.version = 11 : i64} {
  func.func @mlp_bn_fused_kernel(%arg0: memref<8x784xbf16, #tpu.memory_space<vmem>>, %arg1: memref<784x256xbf16, #tpu.memory_space<vmem>>, %arg2: memref<3x256xf32, #tpu.memory_space<vmem>>, %arg3: memref<256x128xbf16, #tpu.memory_space<vmem>>, %arg4: memref<8x128xf32, #tpu.memory_space<vmem>>) attributes {dimension_semantics = [], scalar_prefetch = 0 : i64, scratch_operands = 0 : i64, tpu.core_type = #tpu.core_type<tc>} {
    %c0 = arith.constant 0 : index
    %c0_0 = arith.constant 0 : index
    %0 = vector.load %arg0[%c0, %c0_0] : memref<8x784xbf16, #tpu.memory_space<vmem>>, vector<8x784xbf16>
    %c0_1 = arith.constant 0 : index
    %c0_2 = arith.constant 0 : index
    %1 = vector.load %arg1[%c0_1, %c0_2] : memref<784x256xbf16, #tpu.memory_space<vmem>>, vector<784x256xbf16>
    %cst = arith.constant dense<0.000000e+00> : vector<8x256xf32>
    %2 = tpu.matmul %0, %1, %cst {dimension_numbers = #tpu.dot_dimension_numbers<[1], [0], [0], [1], [0, 0, 1, 1], [], []>} : vector<8x784xbf16>, vector<784x256xbf16>, vector<8x256xf32> -> vector<8x256xf32>
    %cst_3 = arith.constant dense<0.000000e+00> : vector<256xf32>
    %3 = vector.multi_reduction <add>, %2, %cst_3 [0] : vector<8x256xf32> to vector<256xf32>
    %4 = vector.shape_cast %3 : vector<256xf32> to vector<1x256xf32>
    %5 = arith.mulf %2, %2 : vector<8x256xf32>
    %cst_4 = arith.constant dense<0.000000e+00> : vector<256xf32>
    %6 = vector.multi_reduction <add>, %5, %cst_4 [0] : vector<8x256xf32> to vector<256xf32>
    %7 = vector.shape_cast %6 : vector<256xf32> to vector<1x256xf32>
    %c0_5 = arith.constant 0 : index
    %c0_6 = arith.constant 0 : index
    %8 = vector.load %arg2[%c0_5, %c0_6] : memref<3x256xf32, #tpu.memory_space<vmem>>, vector<1x256xf32>
    %c1 = arith.constant 1 : index
    %c0_7 = arith.constant 0 : index
    %9 = vector.load %arg2[%c1, %c0_7] : memref<3x256xf32, #tpu.memory_space<vmem>>, vector<1x256xf32>
    %cst_8 = arith.constant 1.250000e-01 : f32
    %10 = vector.broadcast %cst_8 : f32 to vector<1x256xf32>
    %11 = arith.mulf %4, %10 : vector<1x256xf32>
    %cst_9 = arith.constant 1.250000e-01 : f32
    %12 = vector.broadcast %cst_9 : f32 to vector<1x256xf32>
    %13 = arith.mulf %7, %12 : vector<1x256xf32>
    %14 = arith.mulf %11, %11 : vector<1x256xf32>
    %15 = arith.subf %13, %14 : vector<1x256xf32>
    %cst_10 = arith.constant 0.000000e+00 : f32
    %16 = vector.broadcast %cst_10 : f32 to vector<1x256xf32>
    %17 = arith.maximumf %15, %16 : vector<1x256xf32>
    %cst_11 = arith.constant 9.99999974E-6 : f32
    %18 = vector.broadcast %cst_11 : f32 to vector<1x256xf32>
    %19 = arith.addf %17, %18 : vector<1x256xf32>
    %20 = math.rsqrt %19 : vector<1x256xf32>
    %21 = arith.mulf %8, %20 : vector<1x256xf32>
    %22 = arith.mulf %11, %21 : vector<1x256xf32>
    %23 = arith.subf %9, %22 : vector<1x256xf32>
    %24 = vector.broadcast %21 : vector<1x256xf32> to vector<8x256xf32>
    %25 = arith.mulf %2, %24 : vector<8x256xf32>
    %26 = vector.broadcast %23 : vector<1x256xf32> to vector<8x256xf32>
    %27 = arith.addf %25, %26 : vector<8x256xf32>
    %cst_12 = arith.constant 0.000000e+00 : f32
    %28 = vector.broadcast %cst_12 : f32 to vector<8x256xf32>
    %29 = arith.maximumf %27, %28 : vector<8x256xf32>
    %30 = arith.truncf %29 : vector<8x256xf32> to vector<8x256xbf16>
    %c0_13 = arith.constant 0 : index
    %c0_14 = arith.constant 0 : index
    %31 = vector.load %arg3[%c0_13, %c0_14] : memref<256x128xbf16, #tpu.memory_space<vmem>>, vector<256x128xbf16>
    %cst_15 = arith.constant dense<0.000000e+00> : vector<8x128xf32>
    %32 = tpu.matmul %30, %31, %cst_15 {dimension_numbers = #tpu.dot_dimension_numbers<[1], [0], [0], [1], [0, 0, 1, 1], [], []>} : vector<8x256xbf16>, vector<256x128xbf16>, vector<8x128xf32> -> vector<8x128xf32>
    %c2 = arith.constant 2 : index
    %c0_16 = arith.constant 0 : index
    %33 = vector.load %arg2[%c2, %c0_16] : memref<3x256xf32, #tpu.memory_space<vmem>>, vector<1x128xf32>
    %34 = vector.broadcast %33 : vector<1x128xf32> to vector<8x128xf32>
    %35 = arith.addf %32, %34 : vector<8x128xf32>
    %c0_17 = arith.constant 0 : index
    %c0_18 = arith.constant 0 : index
    %36 = vector.load %arg4[%c0_17, %c0_18] : memref<8x128xf32, #tpu.memory_space<vmem>>, vector<8x128xf32>
    tpu.vector_store %arg4[%c0_17, %c0_18], %35 {strides = array<i32>} : memref<8x128xf32, #tpu.memory_space<vmem>>, vector<8x128xf32>,
    return
  }
}

</mosaic_0001>

<bundles_post_ra>
// kernel: tpu_custom_call.1
= control target key start
LH: loop header
LB: loop body
LE: loop exit
PB: predicated region body
PF: predicated region fallthrough
CT: control target
= control target key end

     0   :  { %9 = vsyncpa [#allocation3], 0  ;;  %s1668_s0 = inlined_call_operand.hbm [shape: bf16[8,784], index: 0, kind: input, shape index: {}]   ;;  %s1669_s1 = inlined_call_operand.hbm [shape: bf16[784,256], index: 1, kind: input, shape index: {}]   ;;  %s1670_s2 = inlined_call_operand.hbm [shape: f32[3,256], index: 2, kind: input, shape index: {}]   ;;  %s1671_s3 = inlined_call_operand.hbm [shape: bf16[256,128], index: 3, kind: input, shape index: {}]   ;;  %s1672_s4 = inlined_call_operand.hbm [shape: f32[8,128], index: 4, kind: output, shape index: {}]  }
   0x1   :  { %10 = vsyncpa [#allocation6], 0 }
   0x2   :  { %11 = vsyncpa [#allocation9], 0 }
   0x3   :  { %12 = vsyncpa [#allocation4], 0  ;;  %s1596_s15 = smov [#allocation5]  }
   0x4   :  { %s28_s16 = sshll.u32 %s1596_s15, 4  ;;  %s29_s16 = int_to_ptr.vmem [resolvable:$true] %s28_s16 }
   0x5   :  { %s1496_s17 = scalar_lea.vmem %s29_s16, 12544  ;;  %p1501_p1 = scmp.lt.s32.totalorder %s29_s16, %s29_s16 }
   0x6   :  { %p1497_p0 = scmp.ne.s32.totalorder %s29_s16, %s1496_s17  ;;  %p1502_p2 = scmp.lt.s32.totalorder %s1496_s17, %s1496_s17 }
   0x8   :  { %p1503_p3 = por %p1502_p2, %p1501_p1 }
   0xa   :  { %p1504_p4 = pnand %p1503_p3, %p1497_p0 }
   0xc   :  { %1507 = shalt.err (!%p1504_p4)
}
   0xd   :  { %s1597_s18 = smov 128   ;;  %s1598_s19 = smov 8  }
   0xe   :  { %34 = dma.hbm_to_vmem [thread:$0]  %s1669_s1, 12544, %s29_s16, [#allocation6], %s1597_s18, %s1597_s18, %s1598_s19  }
   0xf   :  { %s1599_s22 = smov [#allocation2]   ;;  %s1600_s24 = smov [#allocation7]  }
  0x10   :  { %s19_s23 = sshll.u32 %s1599_s22, 4  ;;  %s41_s25 = sshll.u32 %s1600_s24, 4  ;;  %s20_s23 = int_to_ptr.vmem [resolvable:$true] %s19_s23  ;;  %s42_s25 = int_to_ptr.vmem [resolvable:$true] %s41_s25 }
  0x11   :  { %s1516_s26 = scalar_lea.vmem %s20_s23, 448  ;;  %p1521_p6 = scmp.lt.s32.totalorder %s20_s23, %s20_s23 }
  0x12   :  { %p1517_p5 = scmp.ne.s32.totalorder %s20_s23, %s1516_s26  ;;  %p1522_p7 = scmp.lt.s32.totalorder %s1516_s26, %s1516_s26 }
  0x14   :  { %p1523_p8 = por %p1522_p7, %p1521_p6 }
  0x16   :  { %p1524_p9 = pnand %p1523_p8, %p1517_p5 }
  0x18   :  { %1527 = shalt.err (!%p1524_p9)
}
  0x19   :  { %22 = dma.hbm_to_vmem [thread:$0]  %s1668_s0, 448, %s20_s23, [#allocation3]  }
  0x1a   :  { %s1536_s29 = scalar_lea.vmem %s42_s25, 128  ;;  %p1541_p11 = scmp.lt.s32.totalorder %s42_s25, %s42_s25 }
  0x1b   :  { %p1537_p10 = scmp.ne.s32.totalorder %s42_s25, %s1536_s29  ;;  %p1542_p12 = scmp.lt.s32.totalorder %s1536_s29, %s1536_s29 }
  0x1d   :  { %p1543_p13 = por %p1542_p12, %p1541_p11 }
  0x1f   :  { %p1544_p0 = pnand %p1543_p13, %p1537_p10 }
  0x21   :  { %1547 = shalt.err (!%p1544_p0)
}
  0x22   :  { %44 = dma.hbm_to_vmem [thread:$0]  %s1670_s2, 128, %s42_s25, [#allocation6]  }
  0x23   :  { %s1601_s5 = smov [#allocation8]  }
  0x24   :  { %s50_s6 = sshll.u32 %s1601_s5, 4  ;;  %s51_s6 = int_to_ptr.vmem [resolvable:$true] %s50_s6 }
  0x25   :  { %s1556_s7 = scalar_lea.vmem %s51_s6, 2048  ;;  %p1561_p2 = scmp.lt.s32.totalorder %s51_s6, %s51_s6 }
  0x26   :  { %p1557_p1 = scmp.ne.s32.totalorder %s51_s6, %s1556_s7  ;;  %p1562_p3 = scmp.lt.s32.totalorder %s1556_s7, %s1556_s7 }
  0x28   :  { %p1563_p4 = por %p1562_p3, %p1561_p2 }
  0x2a   :  { %p1564_p5 = pnand %p1563_p4, %p1557_p1 }
  0x2c   :  { %1567 = shalt.err (!%p1564_p5)
}
  0x2d   :  { %s1602_s0 = smov 64   ;;  %s1603_s8 = smov 4  }
  0x2e   :  { %56 = dma.hbm_to_vmem [thread:$0]  %s1671_s3, 2048, %s51_s6, [#allocation9], %s1602_s0, %s1602_s0, %s1603_s8  }
  0x2f   :  { %1588 = dma.done.wait [#allocation3], 448  }
  0x30   :  { %1589 = vsyncadd [#allocation3], 4294966848 }
  0x31   :  { %1590 = dma.done.wait [#allocation6], 12672  }
  0x32   :  { %1591 = vsyncadd [#allocation6], 4294954624 }
  0x33   :  { %1592 = dma.done.wait [#allocation9], 2048  }
  0x34   :  { %1593 = vsyncadd [#allocation9], 4294965248  ;;  %v1314_v0 = vld [vmem:[#allocation5 + $0x74] ss:$8 sps:$4 sm:$0xff]   ;;  %v1318_v2 = vld [vmem:[#allocation5 + $0x70] ss:$8 sps:$4 sm:$0xff]  }
  0x35   :  { %v1316_v1 = vld [vmem:[#allocation5 + $0x174] ss:$8 sps:$4 sm:$0xff]   ;;  %690 = vmatprep.subr.bf16.mxu0 %v1314_v0  ;;  %v1319_v3 = vld [vmem:[#allocation5 + $0x170] ss:$8 sps:$4 sm:$0xff]   ;;  %v1320_v4 = vld [vmem:[#allocation5 + $0x64] ss:$8 sps:$4 sm:$0xff]  }
  0x36   :  { %731 = vmatprep.subr.bf16.mxu1 %v1316_v1  ;;  %691 = vmatpush1.bf16.msra.mxu0 %v1318_v2  ;;  %v1322_v5 = vld [vmem:[#allocation5 + $0x164] ss:$8 sps:$4 sm:$0xff]   ;;  %v1324_v6 = vld [vmem:[#allocation5 + $0x60] ss:$8 sps:$4 sm:$0xff]   ;;  %v1326_v8 = vld [vmem:[#allocation5 + $0x54] ss:$8 sps:$4 sm:$0xff]  }
  0x37   :  { %732 = vmatpush1.bf16.msra.mxu1 %v1319_v3  ;;  %692 = vmatprep.subr.bf16.mxu0 %v1320_v4  ;;  %v1325_v7 = vld [vmem:[#allocation5 + $0x160] ss:$8 sps:$4 sm:$0xff]   ;;  %v1328_v9 = vld [vmem:[#allocation5 + $0x154] ss:$8 sps:$4 sm:$0xff]   ;;  %v1330_v10 = vld [vmem:[#allocation5 + $0x50] ss:$8 sps:$4 sm:$0xff]  }
  0x38   :  { %733 = vmatprep.subr.bf16.mxu1 %v1322_v5  ;;  %v1331_v11 = vld [vmem:[#allocation5 + $0x150] ss:$8 sps:$4 sm:$0xff]   ;;  %v1332_v12 = vld [vmem:[#allocation5 + $0x44] ss:$8 sps:$4 sm:$0xff]   ;;  %v1336_v14 = vld [vmem:[#allocation5 + $0x40] ss:$8 sps:$4 sm:$0xff]  }
  0x39   :  { %v1334_v13 = vld [vmem:[#allocation5 + $0x144] ss:$8 sps:$4 sm:$0xff]   ;;  %v1337_v15 = vld [vmem:[#allocation5 + $0x140] ss:$8 sps:$4 sm:$0xff]   ;;  %v1338_v16 = vld [vmem:[#allocation5 + $0x34] ss:$8 sps:$4 sm:$0xff]  }
  0x3a   :  { %693 = vmatpush1.bf16.msra.mxu0 %v1324_v6  ;;  %v1340_v17 = vld [vmem:[#allocation5 + $0x134] ss:$8 sps:$4 sm:$0xff]   ;;  %v1342_v18 = vld [vmem:[#allocation5 + $0x30] ss:$8 sps:$4 sm:$0xff]   ;;  %v1344_v20 = vld [vmem:[#allocation5 + $0x24] ss:$8 sps:$4 sm:$0xff]  }
  0x3b   :  { %734 = vmatpush1.bf16.msra.mxu1 %v1325_v7  ;;  %694 = vmatprep.subr.bf16.mxu0 %v1326_v8  ;;  %v1343_v19 = vld [vmem:[#allocation5 + $0x130] ss:$8 sps:$4 sm:$0xff]   ;;  %v1346_v21 = vld [vmem:[#allocation5 + $0x124] ss:$8 sps:$4 sm:$0xff]   ;;  %v1348_v22 = vld [vmem:[#allocation5 + $0x20] ss:$8 sps:$4 sm:$0xff]  }
  0x3c   :  { %735 = vmatprep.subr.bf16.mxu1 %v1328_v9  ;;  %v1349_v23 = vld [vmem:[#allocation5 + $0x120] ss:$8 sps:$4 sm:$0xff]   ;;  %v1350_v24 = vld [vmem:[#allocation5 + $0x14] ss:$8 sps:$4 sm:$0xff]   ;;  %v1354_v26 = vld [vmem:[#allocation5 + $0x10] ss:$8 sps:$4 sm:$0xff]  }
  0x3d   :  { %v1352_v25 = vld [vmem:[#allocation5 + $0x114] ss:$8 sps:$4 sm:$0xff]   ;;  %v1355_v27 = vld [vmem:[#allocation5 + $0x110] ss:$8 sps:$4 sm:$0xff]   ;;  %v1356_v28 = vld [vmem:[#allocation5 + $0x4] ss:$8 sps:$4 sm:$0xff]  }
  0x3e   :  { %695 = vmatpush1.bf16.msra.mxu0 %v1330_v10  ;;  %v1358_v29 = vld [vmem:[#allocation5 + $0x104] ss:$8 sps:$4 sm:$0xff]   ;;  %v1360_v30 = vld [vmem:[#allocation5] ss:$8 sps:$4 sm:$0xff]   ;;  %v1362_v32 = vld [vmem:[#allocation5 + $0xf4] ss:$8 sps:$4 sm:$0xff]  }
  0x3f   :  { %736 = vmatpush1.bf16.msra.mxu1 %v1331_v11  ;;  %696 = vmatprep.subr.bf16.mxu0 %v1332_v12  ;;  %v1361_v31 = vld [vmem:[#allocation5 + $0x100] ss:$8 sps:$4 sm:$0xff]   ;;  %v1364_v33 = vld [vmem:[#allocation5 + $0x1f4] ss:$8 sps:$4 sm:$0xff]   ;;  %v1366_v34 = vld [vmem:[#allocation5 + $0xf0] ss:$8 sps:$4 sm:$0xff]  }
  0x40   :  { %737 = vmatprep.subr.bf16.mxu1 %v1334_v13  ;;  %v1367_v35 = vld [vmem:[#allocation5 + $0x1f0] ss:$8 sps:$4 sm:$0xff]   ;;  %v1368_v36 = vld [vmem:[#allocation5 + $0xe4] ss:$8 sps:$4 sm:$0xff]   ;;  %v1372_v38 = vld [vmem:[#allocation5 + $0xe0] ss:$8 sps:$4 sm:$0xff]  }
  0x41   :  { %v1370_v37 = vld [vmem:[#allocation5 + $0x1e4] ss:$8 sps:$4 sm:$0xff]   ;;  %v1373_v39 = vld [vmem:[#allocation5 + $0x1e0] ss:$8 sps:$4 sm:$0xff]   ;;  %v1374_v40 = vld [vmem:[#allocation5 + $0xd4] ss:$8 sps:$4 sm:$0xff]  }
  0x42   :  { %697 = vmatpush1.bf16.msra.mxu0 %v1336_v14  ;;  %v1376_v41 = vld [vmem:[#allocation5 + $0x1d4] ss:$8 sps:$4 sm:$0xff]   ;;  %v1378_v42 = vld [vmem:[#allocation5 + $0xd0] ss:$8 sps:$4 sm:$0xff]   ;;  %v1380_v44 = vld [vmem:[#allocation5 + $0xc4] ss:$8 sps:$4 sm:$0xff]  }
  0x43   :  { %738 = vmatpush1.bf16.msra.mxu1 %v1337_v15  ;;  %698 = vmatprep.subr.bf16.mxu0 %v1338_v16  ;;  %v1379_v43 = vld [vmem:[#allocation5 + $0x1d0] ss:$8 sps:$4 sm:$0xff]   ;;  %v1382_v45 = vld [vmem:[#allocation5 + $0x1c4] ss:$8 sps:$4 sm:$0xff]   ;;  %v1384_v49 = vld [vmem:[#allocation5 + $0xc0] ss:$8 sps:$4 sm:$0xff]  }
  0x44   :  { %739 = vmatprep.subr.bf16.mxu1 %v1340_v17  ;;  %v70_v46 = vld [vmem:[#allocation2] sm:$0xff]  ;;  %v71_v48 = vld [vmem:[#allocation2 + $0x8] sm:$0xff]  ;;  %v1386_v52 = vld [vmem:[#allocation5 + $0xb4] ss:$8 sps:$4 sm:$0xff]   ;;  %vm686_vm0 = vcmask 130048   ;;  %v1604_v15 = vmov 0  }
  0x45   :  { %v1159_v47 = vcombine.high %v70_v46, %v70_v46  ;;  %v1385_v50 = vld [vmem:[#allocation5 + $0x1c0] ss:$8 sps:$4 sm:$0xff]   ;;  %v1161_v51 = vcombine.high %v71_v48, %v71_v48  ;;  %v1388_v53 = vld [vmem:[#allocation5 + $0x1b4] ss:$8 sps:$4 sm:$0xff]   ;;  %v1390_v54 = vld [vmem:[#allocation5 + $0xb0] ss:$8 sps:$4 sm:$0xff]   ;;  %v1158_v5 = vcombine.low %v70_v46, %v70_v46  ;;  %v1160_v6 = vcombine.low %v71_v48, %v71_v48 }
  0x46   :  { %699 = vmatpush1.bf16.msra.mxu0 %v1342_v18  ;;  %v1391_v55 = vld [vmem:[#allocation5 + $0x1b0] ss:$8 sps:$4 sm:$0xff]   ;;  %v1392_v56 = vld [vmem:[#allocation5 + $0xa4] ss:$8 sps:$4 sm:$0xff]   ;;  %v1396_v58 = vld [vmem:[#allocation5 + $0xa0] ss:$8 sps:$4 sm:$0xff]  }
  0x47   :  { %740 = vmatpush1.bf16.msra.mxu1 %v1343_v19  ;;  %700 = vmatprep.subr.bf16.mxu0 %v1344_v20  ;;  %v1394_v57 = vld [vmem:[#allocation5 + $0x1a4] ss:$8 sps:$4 sm:$0xff]   ;;  %v1397_v59 = vld [vmem:[#allocation5 + $0x1a0] ss:$8 sps:$4 sm:$0xff]   ;;  %v1398_v60 = vld [vmem:[#allocation5 + $0x94] ss:$8 sps:$4 sm:$0xff]  }
  0x48   :  { %741 = vmatprep.subr.bf16.mxu1 %v1346_v21  ;;  %722 = vmatprep.mubr.bf16.mxu0 %v1159_v47  ;;  %v1400_v61 = vld [vmem:[#allocation5 + $0x194] ss:$8 sps:$4 sm:$0xff]   ;;  %v1402_v62 = vld [vmem:[#allocation5 + $0x90] ss:$8 sps:$4 sm:$0xff]   ;;  %v1404_v0 = vld [vmem:[#allocation5 + $0x84] ss:$8 sps:$4 sm:$0xff]  }
  0x49   :  { %763 = vmatprep.mubr.bf16.mxu1 %v1161_v51  ;;  %v1403_v63 = vld [vmem:[#allocation5 + $0x190] ss:$8 sps:$4 sm:$0xff]   ;;  %v1406_v1 = vld [vmem:[#allocation5 + $0x184] ss:$8 sps:$4 sm:$0xff]   ;;  %v1408_v2 = vld [vmem:[#allocation5 + $0x80] ss:$8 sps:$4 sm:$0xff]  }
  0x4a   :  { %701 = vmatpush1.bf16.msra.mxu0 %v1348_v22  ;;  %v1409_v3 = vld [vmem:[#allocation5 + $0x180] ss:$8 sps:$4 sm:$0xff]   ;;  %v1416_v4 = vld [vmem:[#allocation5 + $0x274] ss:$8 sps:$4 sm:$0xff]   ;;  %v1414_v7 = vld [vmem:[#allocation5 + $0x270] ss:$8 sps:$4 sm:$0xff]  }
  0x4b   :  { %742 = vmatpush1.bf16.msra.mxu1 %v1349_v23  ;;  %702 = vmatprep.subr.bf16.mxu0 %v1350_v24  ;;  %v1459_v8 = vld [vmem:[#allocation5 + $0x300] ss:$8 sps:$4 sm:$0xff]   ;;  %v1461_v9 = vld [vmem:[#allocation5 + $0x304] ss:$8 sps:$4 sm:$0xff]   ;;  %v1644_v12 = vld [vmem:[#allocation2 + $0x10] sm:$0xff]  ;;  %s1606_s2 = smov [#allocation10]  }
  0x4c   :  { %743 = vmatprep.subr.bf16.mxu1 %v1352_v25  ;;  %v1419_v10 = vld [vmem:[#allocation5 + $0x264] ss:$8 sps:$4 sm:$0xff]   ;;  %v1417_v11 = vld [vmem:[#allocation5 + $0x260] ss:$8 sps:$4 sm:$0xff]   ;;  %v1422_v13 = vld [vmem:[#allocation5 + $0x254] ss:$8 sps:$4 sm:$0xff]   ;;  %v1163_v14 = vcombine.high %v1644_v12, %v1644_v12 }
  0x4d   :  { %v1465_v16 = vld [vmem:[#allocation2 + $0x18] ss:$0 sps:$4 sm:$0xff]   ;;  %v1420_v17 = vld [vmem:[#allocation5 + $0x250] ss:$8 sps:$4 sm:$0xff]   ;;  %v1425_v18 = vld [vmem:[#allocation5 + $0x244] ss:$8 sps:$4 sm:$0xff]  }
  0x4e   :  { %703 = vmatpush1.bf16.msra.mxu0 %v1354_v26  ;;  %v1423_v19 = vld [vmem:[#allocation5 + $0x240] ss:$8 sps:$4 sm:$0xff]   ;;  %v1428_v20 = vld [vmem:[#allocation5 + $0x234] ss:$8 sps:$4 sm:$0xff]   ;;  %v1426_v21 = vld [vmem:[#allocation5 + $0x230] ss:$8 sps:$4 sm:$0xff]  }
  0x4f   :  { %744 = vmatpush1.bf16.msra.mxu1 %v1355_v27  ;;  %704 = vmatprep.subr.bf16.mxu0 %v1356_v28  ;;  %v1431_v22 = vld [vmem:[#allocation5 + $0x224] ss:$8 sps:$4 sm:$0xff]   ;;  %v1429_v23 = vld [vmem:[#allocation5 + $0x220] ss:$8 sps:$4 sm:$0xff]   ;;  %v1434_v24 = vld [vmem:[#allocation5 + $0x214] ss:$8 sps:$4 sm:$0xff]  }
  0x50   :  { %745 = vmatprep.subr.bf16.mxu1 %v1358_v29  ;;  %v1432_v25 = vld [vmem:[#allocation5 + $0x210] ss:$8 sps:$4 sm:$0xff]   ;;  %v1437_v26 = vld [vmem:[#allocation5 + $0x204] ss:$8 sps:$4 sm:$0xff]   ;;  %v1435_v27 = vld [vmem:[#allocation5 + $0x200] ss:$8 sps:$4 sm:$0xff]  }
  0x51   :  { %v1440_v28 = vld [vmem:[#allocation5 + $0x2f4] ss:$8 sps:$4 sm:$0xff]   ;;  %v1438_v29 = vld [vmem:[#allocation5 + $0x2f0] ss:$8 sps:$4 sm:$0xff]   ;;  %v1470_v47 = vld [vmem:[#allocation8 + $0x70] sm:$0xff]   ;;  %s1147_s3 = sshll.u32 %s1606_s2, 4  ;;  %s1148_s3 = int_to_ptr.vmem [resolvable:$true] %s1147_s3 }
  0x52   :  { %705 = vmatpush1.bf16.msra.mxu0 %v1360_v30  ;;  %v1443_v30 = vld [vmem:[#allocation5 + $0x2e4] ss:$8 sps:$4 sm:$0xff]   ;;  %v1469_v46 = vld [vmem:[#allocation8 + $0x38] sm:$0xff]   ;;  %v1474_v51 = vld [vmem:[#allocation8 + $0x60] sm:$0xff]   ;;  %s1568_s11 = scalar_lea.vmem %s1148_s3, 128  ;;  %p1573_p7 = scmp.lt.s32.totalorder %s1148_s3, %s1148_s3 }
  0x53   :  { %746 = vmatpush1.bf16.msra.mxu1 %v1361_v31  ;;  %706 = vmatprep.subr.bf16.mxu0 %v1362_v32  ;;  %v1441_v31 = vld [vmem:[#allocation5 + $0x2e0] ss:$8 sps:$4 sm:$0xff]   ;;  %v1446_v32 = vld [vmem:[#allocation5 + $0x2d4] ss:$8 sps:$4 sm:$0xff]   ;;  %p1569_p6 = scmp.ne.s32.totalorder %s1148_s3, %s1568_s11  ;;  %p1574_p8 = scmp.lt.s32.totalorder %s1568_s11, %s1568_s11 }
  0x54   :  { %747 = vmatprep.subr.bf16.mxu1 %v1364_v33  ;;  %v1444_v33 = vld [vmem:[#allocation5 + $0x2d0] ss:$8 sps:$4 sm:$0xff]   ;;  %v1471_v48 = vld [vmem:[#allocation8 + $0x30] sm:$0xff]  }
  0x55   :  { %p1575_p9 = por %p1574_p8, %p1573_p7 }
  0x56   :  { %707 = vmatpush2.bf16.msra.mxu0 %v1366_v34  ;;  %v1449_v34 = vld [vmem:[#allocation5 + $0x2c4] ss:$8 sps:$4 sm:$0xff]  }
  0x57   :  { %748 = vmatpush2.bf16.msra.mxu1 %v1367_v35  ;;  %708 = vmatprep.subr.bf16.mxu0 %v1368_v36  ;;  %v1447_v35 = vld [vmem:[#allocation5 + $0x2c0] ss:$8 sps:$4 sm:$0xff]   ;;  %v1452_v36 = vld [vmem:[#allocation5 + $0x2b4] ss:$8 sps:$4 sm:$0xff]   ;;  %p1576_p10 = pnand %p1575_p9, %p1569_p6 }
  0x58   :  { %749 = vmatprep.subr.bf16.mxu1 %v1370_v37  ;;  %v1450_v37 = vld [vmem:[#allocation5 + $0x2b0] ss:$8 sps:$4 sm:$0xff]  }
  0x5a   :  { %709 = vmatpush2.bf16.msra.mxu0 %v1372_v38  ;;  %v1455_v38 = vld [vmem:[#allocation5 + $0x2a4] ss:$8 sps:$4 sm:$0xff]  }
  0x5b   :  { %750 = vmatpush2.bf16.msra.mxu1 %v1373_v39  ;;  %710 = vmatprep.subr.bf16.mxu0 %v1374_v40  ;;  %v1453_v39 = vld [vmem:[#allocation5 + $0x2a0] ss:$8 sps:$4 sm:$0xff]   ;;  %v1458_v40 = vld [vmem:[#allocation5 + $0x294] ss:$8 sps:$4 sm:$0xff]  }
  0x5c   :  { %751 = vmatprep.subr.bf16.mxu1 %v1376_v41  ;;  %v1456_v41 = vld [vmem:[#allocation5 + $0x290] ss:$8 sps:$4 sm:$0xff]  }
  0x5e   :  { %711 = vmatpush2.bf16.msra.mxu0 %v1378_v42  ;;  %v1464_v42 = vld [vmem:[#allocation5 + $0x284] ss:$8 sps:$4 sm:$0xff]  }
  0x5f   :  { %752 = vmatpush2.bf16.msra.mxu1 %v1379_v43  ;;  %712 = vmatprep.subr.bf16.mxu0 %v1380_v44  ;;  %v1462_v43 = vld [vmem:[#allocation5 + $0x280] ss:$8 sps:$4 sm:$0xff]   ;;  %v1162_v44 = vcombine.low %v1644_v12, %v1644_v12 }
  0x60   :  { %753 = vmatprep.subr.bf16.mxu1 %v1382_v45  ;;  %v1468_v45 = vld [vmem:[#allocation8 + $0x78] sm:$0xff]  }
  0x62   :  { %713 = vmatpush2.bf16.msra.mxu0 %v1384_v49  ;;  %v1472_v49 = vld [vmem:[#allocation8 + $0x68] sm:$0xff]  }
  0x63   :  { %754 = vmatpush2.bf16.msra.mxu1 %v1385_v50  ;;  %714 = vmatprep.subr.bf16.mxu0 %v1386_v52  ;;  %v1473_v50 = vld [vmem:[#allocation8 + $0x28] sm:$0xff]   ;;  %v1475_v52 = vld [vmem:[#allocation8 + $0x20] sm:$0xff]  }
  0x64   :  { %755 = vmatprep.subr.bf16.mxu1 %v1388_v53  ;;  %v1476_v53 = vld [vmem:[#allocation8 + $0x58] sm:$0xff]  }
  0x66   :  { %715 = vmatpush2.bf16.msra.mxu0 %v1390_v54  ;;  %v1477_v54 = vld [vmem:[#allocation8 + $0x18] sm:$0xff]  }
  0x67   :  { %756 = vmatpush2.bf16.msra.mxu1 %v1391_v55  ;;  %716 = vmatprep.subr.bf16.mxu0 %v1392_v56  ;;  %v1478_v55 = vld [vmem:[#allocation8 + $0x50] sm:$0xff]  }
  0x68   :  { %757 = vmatprep.subr.bf16.mxu1 %v1394_v57  ;;  %v1479_v56 = vld [vmem:[#allocation8 + $0x10] sm:$0xff]   ;;  %v1480_v57 = vld [vmem:[#allocation8 + $0x48] sm:$0xff]  }
  0x6a   :  { %717 = vmatpush2.bf16.msra.mxu0 %v1396_v58  ;;  %v1481_v58 = vld [vmem:[#allocation8 + $0x8] sm:$0xff]  }
  0x6b   :  { %758 = vmatpush2.bf16.msra.mxu1 %v1397_v59  ;;  %718 = vmatprep.subr.bf16.mxu0 %v1398_v60  ;;  %v1482_v59 = vld [vmem:[#allocation8 + $0x40] sm:$0xff]  }
  0x6c   :  { %759 = vmatprep.subr.bf16.mxu1 %v1400_v61  ;;  %v1483_v60 = vld [vmem:[#allocation8] sm:$0xff]  }
  0x6e   :  { %719 = vmatpush2.bf16.msra.mxu0 %v1402_v62 }
  0x6f   :  { %760 = vmatpush2.bf16.msra.mxu1 %v1403_v63  ;;  %720 = vmatprep.subr.bf16.mxu0 %v1404_v0 }
  0x70   :  { %761 = vmatprep.subr.bf16.mxu1 %v1406_v1 }
  0x72   :  { %721 = vmatpush2.bf16.msra.mxu0 %v1408_v2 }
  0x73   :  { %762 = vmatpush2.bf16.msra.mxu1 %v1409_v3  ;;  %772 = vmatprep.subr.bf16.mxu0 %v1416_v4 }
  0x74   :  { %827 = vmatprep.subr.bf16.mxu1 %v1461_v9 }
  0x75   :  { %723 = vmatmul.mubr.bf16.vlgmr.msra.gmra.mxu0 %v1158_v5 }
  0x76   :  { %764 = vmatmul.mubr.bf16.vlgmr.msra.gmra.mxu1 %v1160_v6  ;;  %773 = vmatpush1.bf16.msra.mxu0 %v1414_v7 }
  0x77   :  { %828 = vmatpush1.bf16.msra.mxu1 %v1459_v8  ;;  %774 = vmatprep.subr.bf16.mxu0 %v1419_v10 }
  0x78   :  { %845 = vmatprep.mubr.bf16.mxu1 %v1604_v15  ;;  %804 = vmatprep.mubr.bf16.mxu0 %v1163_v14 }
  0x79   :  { %1281 = vmatprep.subr.bf16.mxu1 %v1468_v45 }
  0x7a   :  { %775 = vmatpush1.bf16.msra.mxu0 %v1417_v11 }
  0x7b   :  { %776 = vmatprep.subr.bf16.mxu0 %v1422_v13 }
  0x7e   :  { %1263 = vmatmul.mubr.msk.bf16.vlgmr.msra.gmra.mxu1 %vm686_vm0, %v1465_v16  ;;  %777 = vmatpush1.bf16.msra.mxu0 %v1420_v17 }
  0x7f   :  { %778 = vmatprep.subr.bf16.mxu0 %v1425_v18  ;;  %1282 = vmatpush3.bf16.msra.mxu1 %v1469_v46 }
  0x80   :  { %1283 = vmatprep.subr.bf16.mxu1 %v1470_v47 }
  0x82   :  { %779 = vmatpush1.bf16.msra.mxu0 %v1423_v19 }
  0x83   :  { %780 = vmatprep.subr.bf16.mxu0 %v1428_v20  ;;  %1284 = vmatpush3.bf16.msra.mxu1 %v1471_v48 }
  0x84   :  { %1285 = vmatprep.subr.bf16.mxu1 %v1472_v49 }
  0x86   :  { %781 = vmatpush1.bf16.msra.mxu0 %v1426_v21 }
  0x87   :  { %782 = vmatprep.subr.bf16.mxu0 %v1431_v22  ;;  %1286 = vmatpush3.bf16.msra.mxu1 %v1473_v50 }
  0x88   :  { %1287 = vmatprep.subr.bf16.mxu1 %v1474_v51 }
  0x8a   :  { %783 = vmatpush1.bf16.msra.mxu0 %v1429_v23 }
  0x8b   :  { %784 = vmatprep.subr.bf16.mxu0 %v1434_v24  ;;  %1288 = vmatpush3.bf16.msra.mxu1 %v1475_v52 }
  0x8c   :  { %1289 = vmatprep.subr.bf16.mxu1 %v1476_v53 }
  0x8e   :  { %785 = vmatpush1.bf16.msra.mxu0 %v1432_v25 }
  0x8f   :  { %786 = vmatprep.subr.bf16.mxu0 %v1437_v26  ;;  %1290 = vmatpush3.bf16.msra.mxu1 %v1477_v54 }
  0x90   :  { %1291 = vmatprep.subr.bf16.mxu1 %v1478_v55 }
  0x92   :  { %787 = vmatpush1.bf16.msra.mxu0 %v1435_v27 }
  0x93   :  { %788 = vmatprep.subr.bf16.mxu0 %v1440_v28  ;;  %1292 = vmatpush3.bf16.msra.mxu1 %v1479_v56 }
  0x94   :  { %1293 = vmatprep.subr.bf16.mxu1 %v1480_v57  ;;  %v1605_v57 = vmov 1966171168  }
  0x96   :  { %789 = vmatpush2.bf16.msra.mxu0 %v1438_v29 }
  0x97   :  { %790 = vmatprep.subr.bf16.mxu0 %v1443_v30  ;;  %1294 = vmatpush3.bf16.msra.mxu1 %v1481_v58  ;;  %v901_v58 = vunpack.c.l.s4 %v1605_v57 }
  0x98   :  { %1295 = vmatprep.subr.bf16.mxu1 %v1482_v59  ;;  %v903_v59 = vlaneseq }
  0x9a   :  { %791 = vmatpush2.bf16.msra.mxu0 %v1441_v31 }
  0x9b   :  { %792 = vmatprep.subr.bf16.mxu0 %v1446_v32  ;;  %1296 = vmatpush3.bf16.msra.mxu1 %v1483_v60  ;;  %v902_v60 = vunpack.c.0.s8 %v901_v58 }
  0x9e   :  { %793 = vmatpush2.bf16.msra.mxu0 %v1444_v33 }
  0x9f   :  { %794 = vmatprep.subr.bf16.mxu0 %v1449_v34 }
  0xa2   :  { %795 = vmatpush2.bf16.msra.mxu0 %v1447_v35 }
  0xa3   :  { %796 = vmatprep.subr.bf16.mxu0 %v1452_v36 }
  0xa6   :  { %797 = vmatpush2.bf16.msra.mxu0 %v1450_v37 }
  0xa7   :  { %798 = vmatprep.subr.bf16.mxu0 %v1455_v38 }
  0xaa   :  { %799 = vmatpush2.bf16.msra.mxu0 %v1453_v39 }
  0xab   :  { %800 = vmatprep.subr.bf16.mxu0 %v1458_v40 }
  0xae   :  { %801 = vmatpush2.bf16.msra.mxu0 %v1456_v41 }
  0xaf   :  { %802 = vmatprep.subr.bf16.mxu0 %v1464_v42 }
  0xb2   :  { %803 = vmatpush2.bf16.msra.mxu0 %v1462_v43 }
  0xb5   :  { %805 = vmatmul.mubr.bf16.vlgmr.msra.gmra.mxu0 %v1162_v44 }
 0x135   :  { %v724_v61 = vpop.f32.mrf.mxu0 }
 0x136   :  { %v765_v62 = vpop.f32.mrf.mxu1 }
 0x137   :  { %v766_v63 = vadd.f32 %v765_v62, %v724_v61  ;;  %v726_v0 = vpop.f32.mrf.mxu0  ;;  %v904_v61 = vshrl.u32 %v903_v59, 7 }
 0x138   :  { %v767_v1 = vpop.f32.mrf.mxu1 }
 0x139   :  { %v728_v2 = vpop.f32.mrf.mxu0  ;;  %v768_v11 = vadd.f32 %v767_v1, %v726_v0 }
 0x13a   :  { %v769_v3 = vpop.f32.mrf.mxu1 }
 0x13b   :  { %v729_v4 = vpop.f32.mrf.mxu0  ;;  %v880_v3 = vld [vmem:[#allocation7] ss:$4 sm:$0x3] }
 0x13c   :  { %v770_v5 = vpop.f32.mrf.mxu1 }
 0x13d   :  { %v919_v5 = vsub.s32 0, %v904_v61 }
 0x13e   :  { %v847_v6 = vpop.f32.mrf.mxu1 }
 0x140   :  { %v849_v7 = vpop.f32.mrf.mxu1 }
 0x142   :  { %v851_v8 = vpop.f32.mrf.mxu1 }
 0x144   :  { %v852_v9 = vpop.f32.mrf.mxu1 }
 0x175   :  { %v806_v10 = vpop.f32.mrf.mxu0 }
 0x176   :  { %v807_v12 = vadd.f32 %v806_v10, %v766_v63  ;;  %v905_v63 = vsub.s32 %v902_v60, %v904_v61 }
 0x177   :  { %v808_v13 = vpop.f32.mrf.mxu0 }
 0x178   :  { %v1651_v14 = vadd.f32 %v847_v6, %v807_v12  ;;  %v809_v15 = vadd.f32 %v808_v13, %v768_v11  ;;  %v923_v6 = vsub.s32 1, %v904_v61 }
 0x179   :  { %v810_v16 = vpop.f32.mrf.mxu0 }
 0x17a   :  { %v854_v17 = vrot.slane %v1651_v14, 4  ;;  %v866_v18 = vmul.f32 %v1651_v14, %v1651_v14  ;;  %v1656_v19 = vadd.f32 %v849_v7, %v809_v15  ;;  %v882_v15 = vld [vmem:[#allocation7 + $0x1] ss:$4 sm:$0x3] }
 0x17b   :  { %v811_v20 = vpop.f32.mrf.mxu0 }
 0x17c   :  { %v855_v21 = vadd.f32 %v854_v17, %v1651_v14  ;;  %v868_v22 = vrot.slane %v866_v18, 4  ;;  %v860_v23 = vrot.slane %v1656_v19, 4  ;;  %v867_v24 = vmul.f32 %v1656_v19, %v1656_v19 }
 0x17e   :  { %v856_v25 = vrot.slane %v855_v21, 2  ;;  %v869_v26 = vadd.f32 %v868_v22, %v866_v18  ;;  %v861_v27 = vadd.f32 %v860_v23, %v1656_v19  ;;  %v874_v28 = vrot.slane %v867_v24, 4 }
 0x180   :  { %v857_v29 = vadd.f32 %v856_v25, %v855_v21  ;;  %v870_v30 = vrot.slane %v869_v26, 2  ;;  %v862_v31 = vrot.slane %v861_v27, 2  ;;  %v875_v32 = vadd.f32 %v874_v28, %v867_v24 }
 0x182   :  { %v858_v33 = vrot.slane %v857_v29, 1  ;;  %v871_v34 = vadd.f32 %v870_v30, %v869_v26  ;;  %v863_v35 = vadd.f32 %v862_v31, %v861_v27  ;;  %v876_v36 = vrot.slane %v875_v32, 2  ;;  %v1264_v30 = vld [vmem:[#allocation7 + $0x2] ss:$0 sm:$0xff] }
 0x184   :  { %v859_v37 = vadd.f32 %v858_v33, %v857_v29  ;;  %v872_v38 = vrot.slane %v871_v34, 1  ;;  %v864_v39 = vrot.slane %v863_v35, 1  ;;  %v877_v40 = vadd.f32 %v876_v36, %v875_v32 }
 0x186   :  { %v873_v41 = vadd.f32 %v872_v38, %v871_v34  ;;  %v883_v42 = vmul.f32 0.125, %v859_v37  ;;  %v878_v43 = vrot.slane %v877_v40, 1  ;;  %v865_v44 = vadd.f32 %v864_v39, %v863_v35 }
 0x188   :  { %v885_v45 = vmul.f32 0.125, %v873_v41  ;;  %v887_v46 = vmul.f32 %v883_v42, %v883_v42  ;;  %v879_v47 = vadd.f32 %v878_v43, %v877_v40  ;;  %v884_v48 = vmul.f32 0.125, %v865_v44 }
 0x18a   :  { %v889_v49 = vsub.f32 %v885_v45, %v887_v46  ;;  %v886_v50 = vmul.f32 0.125, %v879_v47  ;;  %v888_v51 = vmul.f32 %v884_v48, %v884_v48 }
 0x18c   :  { %v891_v52 = vmax.f32 %v889_v49, 0.0  ;;  %v890_v53 = vsub.f32 %v886_v50, %v888_v51 }
 0x18e   :  { %v893_v54 = vadd.f32 1e-05, %v891_v52  ;;  %v892_v55 = vmax.f32 %v890_v53, 0.0 }
 0x190   :  { %v894_v56 = vadd.f32 1e-05, %v892_v55  ;;  %1484 = vrsqrt.f32 %v893_v54 }
 0x192   :  { %1486 = vrsqrt.f32 %v894_v56 }
 0x19d   :  { %v1485_v62 = vpop.eup %1484 }
 0x19f   :  { %v1487_v0 = vpop.eup %1486 }
 0x1a0   :  { %v899_v1 = vcombine.low %v1485_v62, %v1487_v0 }
 0x1a2   :  { %v906_v2 = vrot.slane %v899_v1, %v905_v63 }
 0x1a4   :  { %v913_v4 = vrot.slane %v906_v2, %v905_v63 }
 0x1a6   :  { %v915_v7 = vmul.f32 %v913_v4, %v880_v3 }
 0x1a8   :  { %v920_v8 = vrot.slane %v915_v7, %v919_v5  ;;  %v924_v9 = vrot.slane %v915_v7, %v923_v6 }
 0x1aa   :  { %v927_v10 = vmul.f32 %v920_v8, %v883_v42  ;;  %v928_v11 = vmul.f32 %v924_v9, %v884_v48  ;;  %v949_v18 = vmul.f32 %v924_v9, %v1656_v19  ;;  %v948_v21 = vmul.f32 %v920_v8, %v1651_v14 }
 0x1ac   :  { %v931_v12 = vcombine.low %v927_v10, %v928_v11 }
 0x1ae   :  { %v938_v13 = vrot.slane %v931_v12, %v905_v63 }
 0x1b0   :  { %v945_v16 = vrot.slane %v938_v13, %v905_v63 }
 0x1b2   :  { %v947_v17 = vsub.f32 %v882_v15, %v945_v16 }
 0x1b4   :  { %v958_v20 = vrot.slane %v947_v17, %v923_v6  ;;  %v954_v22 = vrot.slane %v947_v17, %v919_v5 }
 0x1b6   :  { %v962_v23 = vadd.f32 %v958_v20, %v949_v18  ;;  %v961_v24 = vadd.f32 %v954_v22, %v948_v21 }
 0x1b8   :  { %v964_v25 = vmax.f32 %v962_v23, 0.0  ;;  %v963_v26 = vmax.f32 %v961_v24, 0.0 }
 0x1ba   :  { %v966_v27 = vpack.c.bf16 %v964_v25, %v964_v25  ;;  %v965_v28 = vpack.c.bf16 %v963_v26, %v963_v26 }
 0x1bc   :  { %1132 = vmatprep.mubr.bf16.mxu1 %v966_v27 }
 0x1bd   :  { %1133 = vmatmul.mubr.bf16.vlgmr.msra.gmra.mxu1 %v965_v28 }
 0x27d   :  { %v1297_v29 = vpop.f32.mrf.mxu1 }
 0x27f   :  { %v1298_v31 = vpop.f32.mrf.mxu1 }
 0x280   :  { %v1299_v32 = vadd.f32 %v1298_v31, %v1297_v29 }
 0x281   :  { %v1300_v33 = vpop.f32.mrf.mxu1 }
 0x282   :  { %v1135_v19 = vadd.f32 %v1299_v32, %v1264_v30 }
 0x283   :  { %v1301_v34 = vpop.f32.mrf.mxu1 }
 0x284   :  { %1140 = vst [vmem:[#allocation10] sm:$0xff] %v1135_v19 }
 0x285   :  { %1579 = shalt.err (!%p1576_p10)
}
 0x286   :  { %1150 = dma.vmem_to_hbm [thread:$0]  %s1148_s3, 128, %s1672_s4, [#allocation4]  }
 0x287   :  { %1594 = dma.done.wait [#allocation4], 128  }
 0x288   :  { %1595 = vsyncadd [#allocation4], 4294967168 }
 0x289   :  { %1154 = vsyncpa [#allocation3], 1 }
 0x28a   :  { %1155 = vsyncpa [#allocation6], 1 }
 0x28b   :  { %1156 = vsyncpa [#allocation9], 1 }
 0x28c   :  { %1157 = vsyncpa [#allocation4], 1 }

</bundles_post_ra>
